<compile_context>
chip_gen: v5e
topology: v5e:2x2
jax: 0.10.0
libtpu: 0.0.40
codegen_flags: <defaults>
</compile_context>

<pallas_src>
import functools

import jax
import jax.numpy as jnp
from jax import lax
from jax.experimental import pallas as pl
from jax.experimental.pallas import tpu as pltpu


# -----------------------------------------------------------------------------
# Config (mirrors the PyTorch `configs` object)
# -----------------------------------------------------------------------------
class Configs:
    use_norm = True
    layer = 2          # number of GCN layers
    channel = 8        # N  (number of nodes / input channels)
    d_model = 32       # GCN hidden width
    dropout = 0.1      # identity at inference
    classes = 2        # -> out_dim = 1, sigmoid head


# -----------------------------------------------------------------------------
# Pallas kernel: one grid step == one BLOCK of batch samples
# -----------------------------------------------------------------------------
def _brainood_kernel(use_norm, n_layers, out_dim, x_ref, adj_ref, *refs):
    # refs layout: [w0, b0, w1, b1, ..., wc, bc, out_ref]
    out_ref = refs[-1]
    prefs = refs[:-1]

    x = x_ref[...]                                     # (bB, N, T), f32
    bB, N, T = x.shape

    # ---- instance norm over the time (lane) axis -----------------------------
    if use_norm:
        mean_t = jnp.mean(x, axis=-1, keepdims=True)   # (bB, N, 1)
        x = x - mean_t
        var_t = jnp.mean(x * x, axis=-1, keepdims=True)   # unbiased=False
        x = x * lax.rsqrt(var_t + 1e-5)                # EUP rsqrt, eps inside sqrt

    # ---- per-sample correlation matrix (torch.corrcoef(x.T)) -----------------
    # Normalize each channel to unit L2 norm, then one batched matmul yields the
    # correlation directly (no diag / divide).  Zero-variance channels produce
    # nan (0 * inf) exactly where torch.corrcoef produces nan, and are zeroed
    # below just like torch.nan_to_num(0, 0, 0).
    mu = jnp.mean(x, axis=-1, keepdims=True)           # (bB, N, 1)
    z = x - mu                                         # (bB, N, T)
    ss = jnp.sum(z * z, axis=-1, keepdims=True)        # (bB, N, 1)
    zhat = z * lax.rsqrt(ss)
    corr = lax.dot_general(zhat, zhat,
                           (((2,), (2,)), ((0,), (0,))),
                           preferred_element_type=jnp.float32)   # (bB, N, N)
    corr = jnp.clip(corr, -1.0, 1.0)                   # torch.corrcoef clamps
    corr = jnp.where(jnp.isfinite(corr), corr, 0.0)    # nan_to_num(0, 0, 0)

    # ---- stacked GCN layers ---------------------------------------------------
    adj = adj_ref[...]                                 # (N, N) normalized adj
    adj_b = jnp.broadcast_to(adj[None], (bB, N, N))    # hoisted out of the loop

    h = corr                                           # (bB, N, F), F = N
    for li in range(n_layers):
        w = prefs[2 * li][...]                         # (F, D)
        b = prefs[2 * li + 1][...]                     # (1, D)
        F = h.shape[-1]
        D = w.shape[-1]
        # linear: fold (batch, node) onto the MXU row axis -> one big matmul
        support = jnp.dot(h.reshape(bB * N, F), w,
                          preferred_element_type=jnp.float32) + b   # (bB*N, D)
        support = support.reshape(bB, N, D)
        # adjacency mix: batched contraction over the node axis
        h = lax.dot_general(adj_b, support,
                            (((2,), (1,)), ((0,), (0,))),
                            preferred_element_type=jnp.float32)     # (bB, N, D)
        h = jnp.maximum(h, 0.0)
        # TODO(synk): dropout omitted (inference-mode identity)

    # ---- node-mean pooling + classifier ---------------------------------------
    pooled = jnp.mean(h, axis=1)                       # (bB, D)
    wc = prefs[-2][...]                                # (D, out_dim)
    bc = prefs[-1][...]                                # (1, out_dim)
    logits = jnp.dot(pooled, wc, preferred_element_type=jnp.float32) + bc
    if out_dim == 1:
        logits = jax.nn.sigmoid(logits)
    out_ref[...] = logits                              # one (bB, out_dim) store


# -----------------------------------------------------------------------------
# Wrapper
# -----------------------------------------------------------------------------
def _choose_block_b(B, max_block=128):
    """Pick a batch block: a divisor of B that is either B itself or a multiple
    of 8 (keeps the output BlockSpec tile-legal), preferring >=2 grid steps
    (dual TensorCore on v7x) and at most `max_block` samples per step."""
    cands = [d for d in range(1, B + 1) if B % d == 0 and (d == B or d % 8 == 0)]
    multi = [d for d in cands if d < B and d <= max_block]
    if multi:
        return max(multi)
    small = [d for d in cands if d <= max_block]
    if small:
        return max(small)
    return B


def brainood_forward(x_enc, adj_norm, gcn_params, wc, bc, *, use_norm, out_dim,
                     max_batch_block=128):
    """x_enc: (B, T, N) float32.  Returns (B, out_dim)."""
    B, T, N = x_enc.shape
    n_layers = len(gcn_params)

    # Time on the lane axis -> lane-dense per-sample slabs.
    x_t = jnp.transpose(x_enc, (0, 2, 1)).astype(jnp.float32)   # (B, N, T)

    block_b = _choose_block_b(B, max_batch_block)
    grid = (B // block_b,)

    flat_params = []
    in_specs = [
        # a block of samples per grid step
        pl.BlockSpec((block_b, N, T), lambda i: (i, 0, 0)),
        # normalized adjacency, resident across grid steps
        pl.BlockSpec((N, N), lambda i: (0, 0)),
    ]
    for (w, bvec) in gcn_params:
        flat_params.append(w)                          # (in, D)
        flat_params.append(bvec)                       # (1, D)
        in_specs.append(pl.BlockSpec(w.shape, lambda i: (0, 0)))
        in_specs.append(pl.BlockSpec(bvec.shape, lambda i: (0, 0)))
    flat_params.append(wc)                             # (D, out_dim)
    flat_params.append(bc)                             # (1, out_dim)
    in_specs.append(pl.BlockSpec(wc.shape, lambda i: (0, 0)))
    in_specs.append(pl.BlockSpec(bc.shape, lambda i: (0, 0)))

    kernel = functools.partial(_brainood_kernel, use_norm, n_layers, out_dim)

    return pl.pallas_call(
        kernel,
        out_shape=jax.ShapeDtypeStruct((B, out_dim), jnp.float32),
        grid_spec=pltpu.PrefetchScalarGridSpec(
            num_scalar_prefetch=0,
            grid=grid,
            in_specs=in_specs,
            out_specs=pl.BlockSpec((block_b, out_dim), lambda i: (i, 0)),
        ),
        compiler_params=pltpu.CompilerParams(
            dimension_semantics=("parallel",)),
    )(x_t, adj_norm, *flat_params)


# -----------------------------------------------------------------------------
# Pure-JAX reference (independent formulation, for the sanity check)
# -----------------------------------------------------------------------------
def brainood_reference(x_enc, adj_norm, gcn_params, wc, bc, *, use_norm, out_dim):
    x = x_enc.astype(jnp.float32)
    if use_norm:
        mean_t = jnp.mean(x, axis=1, keepdims=True)
        x = x - mean_t
        var_t = jnp.mean(x * x, axis=1, keepdims=True)
        x = x / jnp.sqrt(var_t + 1e-5)

    def corr_one(xs):                                   # xs: (T, N)
        z = xs - jnp.mean(xs, axis=0, keepdims=True)
        cov = jnp.dot(z.T, z, precision=lax.Precision.HIGHEST)
        d = jnp.diagonal(cov)
        denom = jnp.sqrt(d[:, None] * d[None, :])
        c = jnp.clip(cov / denom, -1.0, 1.0)
        return jnp.where(jnp.isfinite(c), c, 0.0)

    h = jax.vmap(corr_one)(x)                           # (B, N, N)
    for (w, bvec) in gcn_params:
        support = jnp.einsum('bnf,fd->bnd', h, w,
                             precision=lax.Precision.HIGHEST) + bvec
        h = jnp.einsum('nm,bmd->bnd', adj_norm, support,
                       precision=lax.Precision.HIGHEST)
        h = jnp.maximum(h, 0.0)
    pooled = jnp.mean(h, axis=1)                        # (B, D)
    logits = jnp.dot(pooled, wc, precision=lax.Precision.HIGHEST) + bc
    if out_dim == 1:
        logits = jax.nn.sigmoid(logits)
    return logits


# -----------------------------------------------------------------------------
# Main
# -----------------------------------------------------------------------------
if __name__ == "__main__":
    cfg = Configs()
    B, T, N, D = 4, 16, cfg.channel, cfg.d_model
    out_dim = 1 if cfg.classes == 2 else cfg.classes

    key = jax.random.PRNGKey(0)
    k_x, k_w0, k_b0, k_w1, k_b1, k_wc, k_bc = jax.random.split(key, 7)

    x_enc = jax.random.normal(k_x, (B, T, N), dtype=jnp.float32)

    # normalized adjacency for adj = ones(N, N):  D^-1/2 (ones + I) D^-1/2
    A_hat = jnp.ones((N, N), jnp.float32) + jnp.eye(N, dtype=jnp.float32)
    d = A_hat.sum(1)
    D_inv_sqrt = jnp.diag(d ** -0.5)
    adj_norm = D_inv_sqrt @ A_hat @ D_inv_sqrt

    # deterministic synthetic weights (stored as (in_features, out_features))
    w0 = 0.1 * jax.random.normal(k_w0, (N, D), dtype=jnp.float32)
    b0 = 0.1 * jax.random.normal(k_b0, (1, D), dtype=jnp.float32)
    w1 = 0.1 * jax.random.normal(k_w1, (D, D), dtype=jnp.float32)
    b1 = 0.1 * jax.random.normal(k_b1, (1, D), dtype=jnp.float32)
    wc = 0.1 * jax.random.normal(k_wc, (D, out_dim), dtype=jnp.float32)
    bc = 0.1 * jax.random.normal(k_bc, (1, out_dim), dtype=jnp.float32)
    gcn_params = [(w0, b0), (w1, b1)]

    out = brainood_forward(x_enc, adj_norm, gcn_params, wc, bc,
                           use_norm=cfg.use_norm, out_dim=out_dim)
    out = jax.block_until_ready(out)

    ref = brainood_reference(x_enc, adj_norm, gcn_params, wc, bc,
                             use_norm=cfg.use_norm, out_dim=out_dim)
    ref = jax.block_until_ready(ref)

    assert out.shape == (B, out_dim), out.shape
    assert jnp.allclose(out, ref, rtol=1e-3, atol=1e-3), (out, ref)

    print("KERNEL_OK")
</pallas_src>

<mosaic_0001>
module attributes {stable_mosaic.version = 11 : i64} {
  func.func @_brainood_kernel(%arg0: i32, %arg1: memref<4x8x16xf32, #tpu.memory_space<vmem>>, %arg2: memref<8x8xf32, #tpu.memory_space<vmem>>, %arg3: memref<8x32xf32, #tpu.memory_space<vmem>>, %arg4: memref<1x32xf32, #tpu.memory_space<vmem>>, %arg5: memref<32x32xf32, #tpu.memory_space<vmem>>, %arg6: memref<1x32xf32, #tpu.memory_space<vmem>>, %arg7: memref<32x1xf32, #tpu.memory_space<vmem>>, %arg8: memref<1x1xf32, #tpu.memory_space<vmem>>, %arg9: memref<4x1xf32, #tpu.memory_space<vmem>>) attributes {dimension_semantics = [#tpu.dimension_semantics<parallel>], iteration_bounds = array<i64: 1>, scalar_prefetch = 0 : i64, scratch_operands = 0 : i64, tpu.core_type = #tpu.core_type<tc>, window_params = [{transform_indices = @transform_0, window_bounds = array<i64: 4, 8, 16>}, {pipeline_mode = #tpu.pipeline_mode<synchronous>, transform_indices = @transform_1, window_bounds = array<i64: 8, 8>}, {pipeline_mode = #tpu.pipeline_mode<synchronous>, transform_indices = @transform_2, window_bounds = array<i64: 8, 32>}, {pipeline_mode = #tpu.pipeline_mode<synchronous>, transform_indices = @transform_3, window_bounds = array<i64: 1, 32>}, {pipeline_mode = #tpu.pipeline_mode<synchronous>, transform_indices = @transform_4, window_bounds = array<i64: 32, 32>}, {pipeline_mode = #tpu.pipeline_mode<synchronous>, transform_indices = @transform_5, window_bounds = array<i64: 1, 32>}, {pipeline_mode = #tpu.pipeline_mode<synchronous>, transform_indices = @transform_6, window_bounds = array<i64: 32, 1>}, {pipeline_mode = #tpu.pipeline_mode<synchronous>, transform_indices = @transform_7, window_bounds = array<i64: 1, 1>}, {transform_indices = @transform_8, window_bounds = array<i64: 4, 1>}]} {
    %c0 = arith.constant 0 : index
    %c0_0 = arith.constant 0 : index
    %c0_1 = arith.constant 0 : index
    %0 = vector.load %arg1[%c0, %c0_0, %c0_1] : memref<4x8x16xf32, #tpu.memory_space<vmem>>, vector<4x8x16xf32>
    %cst = arith.constant dense<0.000000e+00> : vector<4x8xf32>
    %1 = vector.multi_reduction <add>, %0, %cst [2] : vector<4x8x16xf32> to vector<4x8xf32>
    %2 = vector.shape_cast %1 : vector<4x8xf32> to vector<4x8x1xf32>
    %cst_2 = arith.constant 1.600000e+01 : f32
    %3 = vector.broadcast %cst_2 : f32 to vector<4x8x1xf32>
    %4 = arith.divf %2, %3 : vector<4x8x1xf32>
    %5 = vector.broadcast %4 : vector<4x8x1xf32> to vector<4x8x16xf32>
    %6 = arith.subf %0, %5 : vector<4x8x16xf32>
    %7 = arith.mulf %6, %6 : vector<4x8x16xf32>
    %cst_3 = arith.constant dense<0.000000e+00> : vector<4x8xf32>
    %8 = vector.multi_reduction <add>, %7, %cst_3 [2] : vector<4x8x16xf32> to vector<4x8xf32>
    %9 = vector.shape_cast %8 : vector<4x8xf32> to vector<4x8x1xf32>
    %cst_4 = arith.constant 1.600000e+01 : f32
    %10 = vector.broadcast %cst_4 : f32 to vector<4x8x1xf32>
    %11 = arith.divf %9, %10 : vector<4x8x1xf32>
    %cst_5 = arith.constant 9.99999974E-6 : f32
    %12 = vector.broadcast %cst_5 : f32 to vector<4x8x1xf32>
    %13 = arith.addf %11, %12 : vector<4x8x1xf32>
    %14 = math.rsqrt %13 : vector<4x8x1xf32>
    %15 = vector.broadcast %14 : vector<4x8x1xf32> to vector<4x8x16xf32>
    %16 = arith.mulf %6, %15 : vector<4x8x16xf32>
    %cst_6 = arith.constant dense<0.000000e+00> : vector<4x8xf32>
    %17 = vector.multi_reduction <add>, %16, %cst_6 [2] : vector<4x8x16xf32> to vector<4x8xf32>
    %18 = vector.shape_cast %17 : vector<4x8xf32> to vector<4x8x1xf32>
    %cst_7 = arith.constant 1.600000e+01 : f32
    %19 = vector.broadcast %cst_7 : f32 to vector<4x8x1xf32>
    %20 = arith.divf %18, %19 : vector<4x8x1xf32>
    %21 = vector.broadcast %20 : vector<4x8x1xf32> to vector<4x8x16xf32>
    %22 = arith.subf %16, %21 : vector<4x8x16xf32>
    %23 = arith.mulf %22, %22 : vector<4x8x16xf32>
    %cst_8 = arith.constant dense<0.000000e+00> : vector<4x8xf32>
    %24 = vector.multi_reduction <add>, %23, %cst_8 [2] : vector<4x8x16xf32> to vector<4x8xf32>
    %25 = vector.shape_cast %24 : vector<4x8xf32> to vector<4x8x1xf32>
    %26 = math.rsqrt %25 : vector<4x8x1xf32>
    %27 = vector.broadcast %26 : vector<4x8x1xf32> to vector<4x8x16xf32>
    %28 = arith.mulf %22, %27 : vector<4x8x16xf32>
    %cst_9 = arith.constant dense<0.000000e+00> : vector<4x8x8xf32>
    %29 = tpu.matmul %28, %28, %cst_9 {dimension_numbers = #tpu.dot_dimension_numbers<[2], [2], [1], [1], [0, 0, 0, 1, 1, 1], [0], [0]>} : vector<4x8x16xf32>, vector<4x8x16xf32>, vector<4x8x8xf32> -> vector<4x8x8xf32>
    %cst_10 = arith.constant -1.000000e+00 : f32
    %cst_11 = arith.constant 1.000000e+00 : f32
    %30 = vector.broadcast %cst_10 : f32 to vector<4x8x8xf32>
    %31 = arith.maximumf %30, %29 : vector<4x8x8xf32>
    %32 = vector.broadcast %cst_11 : f32 to vector<4x8x8xf32>
    %33 = arith.minimumf %32, %31 : vector<4x8x8xf32>
    %34 = tpu.weird %33 : vector<4x8x8xf32> -> vector<4x8x8xi1>
    %cst_12 = arith.constant dense<true> : vector<4x8x8xi1>
    %35 = arith.xori %34, %cst_12 : vector<4x8x8xi1>
    %cst_13 = arith.constant 0.000000e+00 : f32
    %36 = vector.broadcast %cst_13 : f32 to vector<4x8x8xf32>
    %37 = arith.select %35, %33, %36 : vector<4x8x8xi1>, vector<4x8x8xf32>
    %c0_14 = arith.constant 0 : index
    %c0_15 = arith.constant 0 : index
    %38 = vector.load %arg2[%c0_14, %c0_15] : memref<8x8xf32, #tpu.memory_space<vmem>>, vector<8x8xf32>
    %39 = vector.shape_cast %38 : vector<8x8xf32> to vector<1x8x8xf32>
    %40 = vector.shape_cast %39 : vector<1x8x8xf32> to vector<1x8x8xf32>
    %41 = vector.broadcast %40 : vector<1x8x8xf32> to vector<4x8x8xf32>
    %c0_16 = arith.constant 0 : index
    %c0_17 = arith.constant 0 : index
    %42 = vector.load %arg3[%c0_16, %c0_17] : memref<8x32xf32, #tpu.memory_space<vmem>>, vector<8x32xf32>
    %c0_18 = arith.constant 0 : index
    %c0_19 = arith.constant 0 : index
    %43 = vector.load %arg4[%c0_18, %c0_19] : memref<1x32xf32, #tpu.memory_space<vmem>>, vector<1x32xf32>
    %44 = vector.shape_cast %37 : vector<4x8x8xf32> to vector<32x8xf32>
    %cst_20 = arith.constant dense<0.000000e+00> : vector<32x32xf32>
    %45 = tpu.matmul %44, %42, %cst_20 {dimension_numbers = #tpu.dot_dimension_numbers<[1], [0], [0], [1], [0, 0, 1, 1], [], []>} : vector<32x8xf32>, vector<8x32xf32>, vector<32x32xf32> -> vector<32x32xf32>
    %46 = vector.broadcast %43 : vector<1x32xf32> to vector<32x32xf32>
    %47 = arith.addf %45, %46 : vector<32x32xf32>
    %48 = vector.shape_cast %47 : vector<32x32xf32> to vector<4x8x32xf32>
    %cst_21 = arith.constant dense<0.000000e+00> : vector<4x8x32xf32>
    %49 = tpu.matmul %41, %48, %cst_21 {dimension_numbers = #tpu.dot_dimension_numbers<[2], [1], [1], [2], [0, 0, 0, 1, 1, 2], [0], [0]>} : vector<4x8x8xf32>, vector<4x8x32xf32>, vector<4x8x32xf32> -> vector<4x8x32xf32>
    %cst_22 = arith.constant 0.000000e+00 : f32
    %50 = vector.broadcast %cst_22 : f32 to vector<4x8x32xf32>
    %51 = arith.maximumf %49, %50 : vector<4x8x32xf32>
    %c0_23 = arith.constant 0 : index
    %c0_24 = arith.constant 0 : index
    %52 = vector.load %arg5[%c0_23, %c0_24] : memref<32x32xf32, #tpu.memory_space<vmem>>, vector<32x32xf32>
    %c0_25 = arith.constant 0 : index
    %c0_26 = arith.constant 0 : index
    %53 = vector.load %arg6[%c0_25, %c0_26] : memref<1x32xf32, #tpu.memory_space<vmem>>, vector<1x32xf32>
    %54 = vector.shape_cast %51 : vector<4x8x32xf32> to vector<32x32xf32>
    %cst_27 = arith.constant dense<0.000000e+00> : vector<32x32xf32>
    %55 = tpu.matmul %54, %52, %cst_27 {dimension_numbers = #tpu.dot_dimension_numbers<[1], [0], [0], [1], [0, 0, 1, 1], [], []>} : vector<32x32xf32>, vector<32x32xf32>, vector<32x32xf32> -> vector<32x32xf32>
    %56 = vector.broadcast %53 : vector<1x32xf32> to vector<32x32xf32>
    %57 = arith.addf %55, %56 : vector<32x32xf32>
    %58 = vector.shape_cast %57 : vector<32x32xf32> to vector<4x8x32xf32>
    %cst_28 = arith.constant dense<0.000000e+00> : vector<4x8x32xf32>
    %59 = tpu.matmul %41, %58, %cst_28 {dimension_numbers = #tpu.dot_dimension_numbers<[2], [1], [1], [2], [0, 0, 0, 1, 1, 2], [0], [0]>} : vector<4x8x8xf32>, vector<4x8x32xf32>, vector<4x8x32xf32> -> vector<4x8x32xf32>
    %cst_29 = arith.constant 0.000000e+00 : f32
    %60 = vector.broadcast %cst_29 : f32 to vector<4x8x32xf32>
    %61 = arith.maximumf %59, %60 : vector<4x8x32xf32>
    %cst_30 = arith.constant dense<0.000000e+00> : vector<4x32xf32>
    %62 = vector.multi_reduction <add>, %61, %cst_30 [1] : vector<4x8x32xf32> to vector<4x32xf32>
    %cst_31 = arith.constant 8.000000e+00 : f32
    %63 = vector.broadcast %cst_31 : f32 to vector<4x32xf32>
    %64 = arith.divf %62, %63 : vector<4x32xf32>
    %c0_32 = arith.constant 0 : index
    %c0_33 = arith.constant 0 : index
    %65 = vector.load %arg7[%c0_32, %c0_33] : memref<32x1xf32, #tpu.memory_space<vmem>>, vector<32x1xf32>
    %c0_34 = arith.constant 0 : index
    %c0_35 = arith.constant 0 : index
    %66 = vector.load %arg8[%c0_34, %c0_35] : memref<1x1xf32, #tpu.memory_space<vmem>>, vector<1x1xf32>
    %cst_36 = arith.constant dense<0.000000e+00> : vector<4x1xf32>
    %67 = tpu.matmul %64, %65, %cst_36 {dimension_numbers = #tpu.dot_dimension_numbers<[1], [0], [0], [1], [0, 0, 1, 1], [], []>} : vector<4x32xf32>, vector<32x1xf32>, vector<4x1xf32> -> vector<4x1xf32>
    %68 = vector.broadcast %66 : vector<1x1xf32> to vector<4x1xf32>
    %69 = arith.addf %67, %68 : vector<4x1xf32>
    %70 = arith.negf %69 : vector<4x1xf32>
    %71 = math.exp %70 : vector<4x1xf32>
    %cst_37 = arith.constant 1.000000e+00 : f32
    %72 = vector.broadcast %cst_37 : f32 to vector<4x1xf32>
    %73 = arith.addf %72, %71 : vector<4x1xf32>
    %74 = arith.divf %72, %73 : vector<4x1xf32>
    %c0_38 = arith.constant 0 : index
    %c0_39 = arith.constant 0 : index
    %75 = vector.load %arg9[%c0_38, %c0_39] : memref<4x1xf32, #tpu.memory_space<vmem>>, vector<4x1xf32>
    tpu.vector_store %arg9[%c0_38, %c0_39], %74 {strides = array<i32>} : memref<4x1xf32, #tpu.memory_space<vmem>>, vector<4x1xf32>,
    return
  }
  func.func @transform_0(%arg0: i32) -> (i32, i32, i32) {
    %c0_i32 = arith.constant 0 : i32
    %c0_i32_0 = arith.constant 0 : i32
    %c0_i32_1 = arith.constant 0 : i32
    return %arg0, %c0_i32, %c0_i32_0 : i32, i32, i32
  }
  func.func @transform_1(%arg0: i32) -> (i32, i32) {
    %c0_i32 = arith.constant 0 : i32
    %c0_i32_0 = arith.constant 0 : i32
    %c0_i32_1 = arith.constant 0 : i32
    return %c0_i32, %c0_i32_0 : i32, i32
  }
  func.func @transform_2(%arg0: i32) -> (i32, i32) {
    %c0_i32 = arith.constant 0 : i32
    %c0_i32_0 = arith.constant 0 : i32
    %c0_i32_1 = arith.constant 0 : i32
    return %c0_i32, %c0_i32_0 : i32, i32
  }
  func.func @transform_3(%arg0: i32) -> (i32, i32) {
    %c0_i32 = arith.constant 0 : i32
    %c0_i32_0 = arith.constant 0 : i32
    %c0_i32_1 = arith.constant 0 : i32
    return %c0_i32, %c0_i32_0 : i32, i32
  }
  func.func @transform_4(%arg0: i32) -> (i32, i32) {
    %c0_i32 = arith.constant 0 : i32
    %c0_i32_0 = arith.constant 0 : i32
    %c0_i32_1 = arith.constant 0 : i32
    return %c0_i32, %c0_i32_0 : i32, i32
  }
  func.func @transform_5(%arg0: i32) -> (i32, i32) {
    %c0_i32 = arith.constant 0 : i32
    %c0_i32_0 = arith.constant 0 : i32
    %c0_i32_1 = arith.constant 0 : i32
    return %c0_i32, %c0_i32_0 : i32, i32
  }
  func.func @transform_6(%arg0: i32) -> (i32, i32) {
    %c0_i32 = arith.constant 0 : i32
    %c0_i32_0 = arith.constant 0 : i32
    %c0_i32_1 = arith.constant 0 : i32
    return %c0_i32, %c0_i32_0 : i32, i32
  }
  func.func @transform_7(%arg0: i32) -> (i32, i32) {
    %c0_i32 = arith.constant 0 : i32
    %c0_i32_0 = arith.constant 0 : i32
    %c0_i32_1 = arith.constant 0 : i32
    return %c0_i32, %c0_i32_0 : i32, i32
  }
  func.func @transform_8(%arg0: i32) -> (i32, i32) {
    %c0_i32 = arith.constant 0 : i32
    %c0_i32_0 = arith.constant 0 : i32
    return %arg0, %c0_i32 : i32, i32
  }
}

</mosaic_0001>

<bundles_post_ra>
// kernel: tpu_custom_call.1
= control target key start
LH: loop header
LB: loop body
LE: loop exit
PB: predicated region body
PF: predicated region fallthrough
CT: control target
= control target key end

     0   :  { %s1063_s0 = inlined_call_operand.vmem [shape: f32[4,8,16], index: 0, kind: input, shape index: {}]   ;;  %s1064_s1 = inlined_call_operand.hbm [shape: f32[8,8], index: 1, kind: input, shape index: {}]   ;;  %s1065_s2 = inlined_call_operand.hbm [shape: f32[8,32], index: 2, kind: input, shape index: {}]   ;;  %s1066_s3 = inlined_call_operand.vmem [shape: f32[1,32], index: 3, kind: input, shape index: {}]   ;;  %s1067_s4 = inlined_call_operand.hbm [shape: f32[32,32], index: 4, kind: input, shape index: {}]   ;;  %s1068_s5 = inlined_call_operand.vmem [shape: f32[1,32], index: 5, kind: input, shape index: {}]   ;;  %s1069_s6 = inlined_call_operand.vmem [shape: f32[32,1], index: 6, kind: input, shape index: {}]   ;;  %s1070_s7 = inlined_call_operand.<no memory space> [shape: f32[1,1], index: 7, kind: input, shape index: {}]   ;;  %s1071_s8 = inlined_call_operand.vmem [shape: f32[4,1], index: 8, kind: output, shape index: {}]  }
   0x1   :  { %v13_v0 = vstv %s1070_s7 }
   0x2   :  { %14 = vst [vmem:[#allocation2] sm:$0x1] %v13_v0 }
   0x3   :  { %15 = vsyncpa [#allocation4], 0 }
   0x4   :  { %16 = vsyncpa [#allocation6], 0  ;;  %s35_s9 = sshll.u32 %s1065_s2, 4  ;;  %s882_s10 = smov [#allocation5]   ;;  %s36_s9 = int_to_ptr.hbm [resolvable:$true] %s35_s9 }
   0x5   :  { %s37_s11 = sshll.u32 %s882_s10, 4  ;;  %s24_s14 = sshll.u32 %s1064_s1, 4  ;;  %s38_s11 = int_to_ptr.vmem [resolvable:$true] %s37_s11  ;;  %s25_s14 = int_to_ptr.hbm [resolvable:$true] %s24_s14 }
   0x6   :  { %40 = dma.hbm_to_vmem [thread:$0]  %s36_s9, 128, %s38_s11, [#allocation6]  }
   0x7   :  { %s883_s15 = smov [#allocation3]   ;;  %s47_s18 = sshll.u32 %s1067_s4, 4  ;;  %s48_s18 = int_to_ptr.hbm [resolvable:$true] %s47_s18 }
   0x8   :  { %s26_s16 = sshll.u32 %s883_s15, 4  ;;  %s884_s2 = smov [#allocation7]   ;;  %s27_s16 = int_to_ptr.vmem [resolvable:$true] %s26_s16 }
   0x9   :  { %29 = dma.hbm_to_vmem [thread:$0]  %s25_s14, 128, %s27_s16, [#allocation4]  }
   0xa   :  { %s49_s19 = sshll.u32 %s884_s2, 4  ;;  %s885_s20 = smov 128   ;;  %s50_s19 = int_to_ptr.vmem [resolvable:$true] %s49_s19 }
   0xb   :  { %s886_s21 = smov 8  }
   0xc   :  { %55 = dma.hbm_to_vmem [thread:$0]  %s48_s18, 512, %s50_s19, [#allocation6], %s885_s20, %s885_s20, %s886_s21  }
   0xd   :  { %878 = dma.done.wait [#allocation4], 128  }
   0xe   :  { %879 = vsyncadd [#allocation4], 4294967168 }
   0xf   :  { %880 = dma.done.wait [#allocation6], 640  }
  0x10   :  { %881 = vsyncadd [#allocation6], 4294966656  ;;  %vm78_vm0 = vcmask 130048   ;;  %v76_v1 = vld [vmem:[%s1063_s0 + $0x10] sm:$0xff]  ;;  %v74_v2 = vld [vmem:[%s1063_s0] sm:$0xff]  ;;  %v887_v9 = vmov 16.0  }
  0x11   :  { %v85_v3 = vsel %vm78_vm0, %v76_v1, 0.0  ;;  %v79_v4 = vsel %vm78_vm0, %v74_v2, 0.0  ;;  %v77_v5 = vld [vmem:[%s1063_s0 + $0x18] sm:$0xff]  ;;  %v75_v6 = vld [vmem:[%s1063_s0 + $0x8] sm:$0xff]  ;;  %782 = vrcp.f32 %v887_v9 }
  0x12   :  { %86 = vadd.xlane.f32.xlu1 %v85_v3  ;;  %80 = vadd.xlane.f32.xlu0 %v79_v4  ;;  %v88_v7 = vsel %vm78_vm0, %v77_v5, 0.0  ;;  %v82_v8 = vsel %vm78_vm0, %v75_v6, 0.0 }
  0x17   :  { %v783_v10 = vpop.eup %782 }
  0x18   :  { %v92_v11 = vmul.f32 16.0, %v783_v10  ;;  %vm96_vm1 = vweird.f32 %v783_v10 }
  0x1a   :  { %89 = vadd.xlane.f32.xlu1 %v88_v7  ;;  %83 = vadd.xlane.f32.xlu0 %v82_v8  ;;  %v93_v12 = vsub.f32 1.0, %v92_v11 }
  0x1c   :  { %v94_v13 = vmul.f32 %v783_v10, %v93_v12 }
  0x1e   :  { %v95_v14 = vadd.f32 %v783_v10, %v94_v13 }
  0x20   :  { %v963_v15 = vsel %vm96_vm1, %v783_v10, %v95_v14 }
  0x85   :  { %v87_v16 = vpop.xlane.xlu1 %86  ;;  %v81_v17 = vpop.xlane.xlu0 %80 }
  0x86   :  { %v100_v18 = vmul.f32 %v963_v15, %v87_v16  ;;  %v98_v19 = vmul.f32 %v963_v15, %v81_v17 }
  0x88   :  { %v967_v20 = vsub.f32 %v76_v1, %v100_v18  ;;  %v102_v21 = vsub.f32 %v74_v2, %v98_v19 }
  0x8a   :  { %v108_v22 = vmul.f32 %v967_v20, %v967_v20  ;;  %v106_v23 = vmul.f32 %v102_v21, %v102_v21 }
  0x8c   :  { %v116_v24 = vsel %vm78_vm0, %v108_v22, 0.0  ;;  %v110_v25 = vsel %vm78_vm0, %v106_v23, 0.0 }
  0x8d   :  { %v90_v26 = vpop.xlane.xlu1 %89  ;;  %117 = vadd.xlane.f32.xlu0 %v116_v24  ;;  %111 = vadd.xlane.f32.xlu2 %v110_v25  ;;  %v84_v27 = vpop.xlane.xlu0 %83 }
  0x8e   :  { %v101_v28 = vmul.f32 %v963_v15, %v90_v26  ;;  %v99_v29 = vmul.f32 %v963_v15, %v84_v27 }
  0x90   :  { %v975_v30 = vsub.f32 %v77_v5, %v101_v28  ;;  %v977_v31 = vsub.f32 %v75_v6, %v99_v29 }
  0x92   :  { %v109_v32 = vmul.f32 %v975_v30, %v975_v30  ;;  %v107_v33 = vmul.f32 %v977_v31, %v977_v31 }
  0x94   :  { %v119_v34 = vsel %vm78_vm0, %v109_v32, 0.0  ;;  %v113_v35 = vsel %vm78_vm0, %v107_v33, 0.0 }
  0x95   :  { %120 = vadd.xlane.f32.xlu1 %v119_v34  ;;  %114 = vadd.xlane.f32.xlu2 %v113_v35 }
 0x100   :  { %v112_v36 = vpop.xlane.xlu2 %111  ;;  %v118_v37 = vpop.xlane.xlu0 %117 }
 0x101   :  { %v122_v38 = vmul.f32 %v112_v36, %v963_v15  ;;  %v124_v39 = vmul.f32 %v118_v37, %v963_v15 }
 0x103   :  { %v126_v40 = vadd.f32 1e-05, %v122_v38  ;;  %v128_v41 = vadd.f32 1e-05, %v124_v39 }
 0x105   :  { %784 = vrsqrt.f32 %v126_v40  ;;  %vm156_vm3 = vweird.f32 %v128_v41  ;;  %vm136_vm5 = vweird.f32 %v126_v40 }
 0x106   :  { %786 = vrsqrt.f32 %v128_v41 }
 0x108   :  { %v121_v42 = vpop.xlane.xlu1 %120  ;;  %v115_v43 = vpop.xlane.xlu2 %114 }
 0x109   :  { %v125_v44 = vmul.f32 %v121_v42, %v963_v15  ;;  %v123_v45 = vmul.f32 %v115_v43, %v963_v15 }
 0x10b   :  { %v785_v46 = vpop.eup %784  ;;  %v129_v47 = vadd.f32 1e-05, %v125_v44  ;;  %v127_v48 = vadd.f32 1e-05, %v123_v45 }
 0x10c   :  { %v787_v49 = vpop.eup %786  ;;  %v131_v50 = vmul.f32 %v785_v46, %v126_v40  ;;  %vm137_vm2 = vweird.f32 %v785_v46 }
 0x10d   :  { %v151_v51 = vmul.f32 %v787_v49, %v128_v41  ;;  %788 = vrsqrt.f32 %v129_v47  ;;  %vm157_vm4 = vweird.f32 %v787_v49  ;;  %vm138_vm6 = vmor %vm136_vm5, %vm137_vm2  ;;  %vm166_vm8 = vweird.f32 %v129_v47 }
 0x10e   :  { %v132_v52 = vmul.f32 %v785_v46, %v131_v50  ;;  %790 = vrsqrt.f32 %v127_v48  ;;  %vm158_vm7 = vmor %vm156_vm3, %vm157_vm4  ;;  %vm146_vm12 = vweird.f32 %v127_v48 }
 0x10f   :  { %v152_v53 = vmul.f32 %v787_v49, %v151_v51 }
 0x110   :  { %v133_v54 = vmul.f32 0.5, %v132_v52 }
 0x111   :  { %v153_v55 = vmul.f32 0.5, %v152_v53 }
 0x112   :  { %v134_v56 = vsub.f32 1.5, %v133_v54 }
 0x113   :  { %v789_v57 = vpop.eup %788  ;;  %v154_v58 = vsub.f32 1.5, %v153_v55 }
 0x114   :  { %v791_v59 = vpop.eup %790  ;;  %v161_v60 = vmul.f32 %v789_v57, %v129_v47  ;;  %v135_v61 = vmul.f32 %v785_v46, %v134_v56  ;;  %vm167_vm9 = vweird.f32 %v789_v57 }
 0x115   :  { %v141_v62 = vmul.f32 %v791_v59, %v127_v48  ;;  %v155_v63 = vmul.f32 %v787_v49, %v154_v58  ;;  %vm168_vm10 = vmor %vm166_vm8, %vm167_vm9  ;;  %vm147_vm11 = vweird.f32 %v791_v59 }
 0x116   :  { %v162_v0 = vmul.f32 %v789_v57, %v161_v60  ;;  %v139_v1 = vsel %vm138_vm6, %v785_v46, %v135_v61  ;;  %vm148_vm13 = vmor %vm146_vm12, %vm147_vm11  ;;  %vm372_vm12 = vcmask 64512  }
 0x117   :  { %v142_v2 = vmul.f32 %v791_v59, %v141_v62  ;;  %v170_v3 = vmul.f32 %v139_v1, %v102_v21  ;;  %v159_v4 = vsel %vm158_vm7, %v787_v49, %v155_v63 }
 0x118   :  { %v163_v5 = vmul.f32 0.5, %v162_v0  ;;  %v172_v6 = vmul.f32 %v159_v4, %v967_v20 }
 0x119   :  { %v143_v7 = vmul.f32 0.5, %v142_v2  ;;  %v174_v8 = vsel %vm78_vm0, %v170_v3, 0.0 }
 0x11a   :  { %v164_v9 = vsub.f32 1.5, %v163_v5  ;;  %175 = vadd.xlane.f32.xlu2 %v174_v8  ;;  %v180_v10 = vsel %vm78_vm0, %v172_v6, 0.0 }
 0x11b   :  { %v144_v11 = vsub.f32 1.5, %v143_v7  ;;  %181 = vadd.xlane.f32.xlu1 %v180_v10 }
 0x11c   :  { %v165_v12 = vmul.f32 %v789_v57, %v164_v9 }
 0x11d   :  { %v145_v13 = vmul.f32 %v791_v59, %v144_v11 }
 0x11e   :  { %v169_v14 = vsel %vm168_vm10, %v789_v57, %v165_v12  ;;  %v367_v12 = vld [vmem:[#allocation5] sm:$0xff] }
 0x11f   :  { %v173_v16 = vmul.f32 %v169_v14, %v975_v30  ;;  %v149_v17 = vsel %vm148_vm13, %v791_v59, %v145_v13  ;;  %vm888_vm13 = vmmov 1  }
 0x120   :  { %v171_v18 = vmul.f32 %v149_v17, %v977_v31 }
 0x121   :  { %v183_v19 = vsel %vm78_vm0, %v173_v16, 0.0 }
 0x122   :  { %184 = vadd.xlane.f32.xlu2 %v183_v19  ;;  %v177_v20 = vsel %vm78_vm0, %v171_v18, 0.0 }
 0x123   :  { %178 = vadd.xlane.f32.xlu0 %v177_v20 }
 0x18d   :  { %v176_v21 = vpop.xlane.xlu2 %175 }
 0x18e   :  { %v186_v22 = vmul.f32 %v176_v21, %v963_v15  ;;  %v182_v23 = vpop.xlane.xlu1 %181 }
 0x18f   :  { %v188_v24 = vmul.f32 %v182_v23, %v963_v15 }
 0x190   :  { %v190_v25 = vsub.f32 %v170_v3, %v186_v22 }
 0x191   :  { %v192_v26 = vsub.f32 %v172_v6, %v188_v24 }
 0x192   :  { %v194_v27 = vmul.f32 %v190_v25, %v190_v25 }
 0x193   :  { %v196_v28 = vmul.f32 %v192_v26, %v192_v26 }
 0x194   :  { %v198_v29 = vsel %vm78_vm0, %v194_v27, 0.0 }
 0x195   :  { %199 = vadd.xlane.f32.xlu0 %v198_v29  ;;  %v185_v30 = vpop.xlane.xlu2 %184  ;;  %v204_v31 = vsel %vm78_vm0, %v196_v28, 0.0  ;;  %v366_v29 = vld [vmem:[#allocation3] sm:$0xff] }
 0x196   :  { %v189_v32 = vmul.f32 %v185_v30, %v963_v15  ;;  %205 = vadd.xlane.f32.xlu2 %v204_v31  ;;  %v179_v33 = vpop.xlane.xlu0 %178 }
 0x197   :  { %v187_v34 = vmul.f32 %v179_v33, %v963_v15  ;;  %v503_v33 = vld [vmem:[#allocation7 + $0x10] sm:$0xff] }
 0x198   :  { %v1002_v35 = vsub.f32 %v173_v16, %v189_v32  ;;  %v504_v32 = vld [vmem:[#allocation7 + $0x18] sm:$0xff] }
 0x199   :  { %v191_v36 = vsub.f32 %v171_v18, %v187_v34 }
 0x19a   :  { %v197_v37 = vmul.f32 %v1002_v35, %v1002_v35 }
 0x19b   :  { %v195_v38 = vmul.f32 %v191_v36, %v191_v36 }
 0x19c   :  { %v207_v39 = vsel %vm78_vm0, %v197_v37, 0.0 }
 0x19d   :  { %208 = vadd.xlane.f32.xlu0 %v207_v39  ;;  %v201_v40 = vsel %vm78_vm0, %v195_v38, 0.0  ;;  %v502_v38 = vld [vmem:[#allocation7 + $0x8] sm:$0xff]  ;;  %v501_v39 = vld [vmem:[#allocation7] sm:$0xff] }
 0x19e   :  { %202 = vadd.xlane.f32.xlu1 %v201_v40 }
 0x208   :  { %v200_v41 = vpop.xlane.xlu0 %199 }
 0x209   :  { %v206_v42 = vpop.xlane.xlu2 %205  ;;  %792 = vrsqrt.f32 %v200_v41  ;;  %vm216_vm1 = vweird.f32 %v200_v41 }
 0x20a   :  { %794 = vrsqrt.f32 %v206_v42  ;;  %vm236_vm2 = vweird.f32 %v206_v42 }
 0x20f   :  { %v793_v43 = vpop.eup %792 }
 0x210   :  { %v795_v44 = vpop.eup %794  ;;  %v211_v15 = vmul.f32 %v793_v43, %v200_v41  ;;  %v209_v45 = vpop.xlane.xlu0 %208  ;;  %vm217_vm14 = vweird.f32 %v793_v43 }
 0x211   :  { %v231_v46 = vmul.f32 %v795_v44, %v206_v42  ;;  %v203_v47 = vpop.xlane.xlu1 %202  ;;  %796 = vrsqrt.f32 %v209_v45  ;;  %vm237_vm15 = vweird.f32 %v795_v44  ;;  %vm218_vm3 = vmor %vm216_vm1, %vm217_vm14  ;;  %vm246_vm7 = vweird.f32 %v209_v45 }
 0x212   :  { %v212_v48 = vmul.f32 %v793_v43, %v211_v15  ;;  %798 = vrsqrt.f32 %v203_v47  ;;  %vm238_vm4 = vmor %vm236_vm2, %vm237_vm15  ;;  %vm226_vm8 = vweird.f32 %v203_v47 }
 0x213   :  { %v232_v49 = vmul.f32 %v795_v44, %v231_v46 }
 0x214   :  { %v213_v50 = vmul.f32 0.5, %v212_v48 }
 0x215   :  { %v233_v51 = vmul.f32 0.5, %v232_v49 }
 0x216   :  { %v214_v52 = vsub.f32 1.5, %v213_v50 }
 0x217   :  { %v797_v53 = vpop.eup %796  ;;  %v234_v54 = vsub.f32 1.5, %v233_v51 }
 0x218   :  { %v799_v55 = vpop.eup %798  ;;  %v241_v56 = vmul.f32 %v797_v53, %v209_v45  ;;  %v215_v57 = vmul.f32 %v793_v43, %v214_v52  ;;  %vm247_vm5 = vweird.f32 %v797_v53 }
 0x219   :  { %v235_v58 = vmul.f32 %v795_v44, %v234_v54  ;;  %v221_v59 = vmul.f32 %v799_v55, %v203_v47  ;;  %vm227_vm6 = vweird.f32 %v799_v55  ;;  %vm248_vm9 = vmor %vm246_vm7, %vm247_vm5  ;;  %vm509_vm5 = vcmask 261120   ;;  %v780_v47 = vld [vmem:[%s1068_s5] ss:$0 sm:$0xff] }
 0x21a   :  { %v242_v60 = vmul.f32 %v797_v53, %v241_v56  ;;  %v219_v61 = vsel %vm218_vm3, %v793_v43, %v215_v57  ;;  %vm228_vm10 = vmor %vm226_vm8, %vm227_vm6  ;;  %v677_v57 = vld [vmem:[%s1069_s6 + $0x18] sm:$0xff]  ;;  %vm686_vm7 = vcmask 1041409   ;;  %vm688_vm8 = vcmask 1042434  }
 0x21b   :  { %v222_v62 = vmul.f32 %v799_v55, %v221_v59  ;;  %v250_v63 = vmul.f32 %v219_v61, %v190_v25  ;;  %v239_v0 = vsel %vm238_vm4, %v795_v44, %v235_v58  ;;  %v676_v59 = vld [vmem:[%s1069_s6 + $0x10] sm:$0xff]  ;;  %v675_v61 = vld [vmem:[%s1069_s6 + $0x8] sm:$0xff] }
 0x21c   :  { %v243_v1 = vmul.f32 0.5, %v242_v60  ;;  %v252_v2 = vmul.f32 %v239_v0, %v192_v26  ;;  %v779_v26 = vld [vmem:[%s1066_s3] ss:$0 sm:$0xff]  ;;  %v889_v60 = vmov 8.0  }
 0x21d   :  { %v223_v3 = vmul.f32 0.5, %v222_v62  ;;  %741 = vmatpush.xpose.msk.msra.mxu0 %vm78_vm0, %v250_v63  ;;  %800 = vrcp.f32 %v889_v60  ;;  %v674_v0 = vld [vmem:[%s1069_s6] sm:$0xff] }
 0x21e   :  { %v244_v4 = vsub.f32 1.5, %v243_v1  ;;  %745 = vmatpush.xpose.msk.msra.mxu2 %vm78_vm0, %v252_v2 }
 0x21f   :  { %v224_v5 = vsub.f32 1.5, %v223_v3 }
 0x220   :  { %v245_v6 = vmul.f32 %v797_v53, %v244_v4  ;;  %742 = vmatmul.msk.f32.vlgmr.msra.gmra.mxu0 %vm78_vm0, %v250_v63 }
 0x221   :  { %v225_v7 = vmul.f32 %v799_v55, %v224_v5  ;;  %746 = vmatmul.msk.f32.vlgmr.msra.gmra.mxu2 %vm78_vm0, %v252_v2  ;;  %400 = vmatpush.msrb.mxu0 %v367_v12 }
 0x222   :  { %v249_v8 = vsel %vm248_vm9, %v797_v53, %v245_v6  ;;  %vm690_vm9 = vcmask 1043459  }
 0x223   :  { %v229_v9 = vsel %vm228_vm10, %v799_v55, %v225_v7  ;;  %v253_v10 = vmul.f32 %v249_v8, %v1002_v35  ;;  %v801_v5 = vpop.eup %800 }
 0x224   :  { %v251_v11 = vmul.f32 %v229_v9, %v191_v36  ;;  %v664_v8 = vmul.f32 8.0, %v801_v5  ;;  %vm668_vm6 = vweird.f32 %v801_v5 }
 0x225   :  { %747 = vmatpush.xpose.msk.msra.mxu3 %vm78_vm0, %v253_v10 }
 0x226   :  { %743 = vmatpush.xpose.msk.msra.mxu1 %vm78_vm0, %v251_v11 }
 0x228   :  { %748 = vmatmul.msk.f32.vlgmr.msra.gmra.mxu3 %vm78_vm0, %v253_v10 }
 0x229   :  { %744 = vmatmul.msk.f32.vlgmr.msra.gmra.mxu1 %vm78_vm0, %v251_v11  ;;  %v665_v11 = vsub.f32 1.0, %v664_v8 }
 0x29d   :  { %v274_v13 = vpop.f32.mrf.mxu0 }
 0x29e   :  { %v749_v14 = vclamps-f32 %v274_v13, 1.0 }
 0x2a0   :  { %vm354_vm11 = vweird.f32 %v749_v14 }
 0x2a1   :  { %vm358_vm14 = vmxor %vm354_vm11, %vm888_vm13 }
 0x2a2   :  { %v362_v16 = vsel %vm358_vm14, %v749_v14, 0.0 }
 0x2a3   :  { %753 = vmatmul.msk.f32.vlgmr.msrb.gmra.mxu0 %vm372_vm12, %v362_v16 }
 0x2a4   :  { %v320_v17 = vpop.f32.mrf.mxu2 }
 0x2a5   :  { %v751_v20 = vclamps-f32 %v320_v17, 1.0  ;;  %v666_v17 = vmul.f32 %v801_v5, %v665_v11 }
 0x2a6   :  { %v297_v18 = vpop.f32.mrf.mxu1 }
 0x2a7   :  { %v750_v19 = vclamps-f32 %v297_v18, 1.0  ;;  %vm356_vm0 = vweird.f32 %v751_v20 }
 0x2a8   :  { %vm360_vm2 = vmxor %vm356_vm0, %vm888_vm13 }
 0x2a9   :  { %vm355_vm15 = vweird.f32 %v750_v19  ;;  %v364_v24 = vsel %vm360_vm2, %v751_v20, 0.0 }
 0x2aa   :  { %vm359_vm1 = vmxor %vm355_vm15, %vm888_vm13 }
 0x2ab   :  { %v363_v21 = vsel %vm359_vm1, %v750_v19, 0.0  ;;  %v343_v22 = vpop.f32.mrf.mxu3 }
 0x2ac   :  { %754 = vmatmul.msk.f32.gmra.mxu0 %vm372_vm12, %v363_v21  ;;  %v752_v23 = vclamps-f32 %v343_v22, 1.0 }
 0x2ae   :  { %vm357_vm3 = vweird.f32 %v752_v23 }
 0x2af   :  { %vm361_vm4 = vmxor %vm357_vm3, %vm888_vm13  ;;  %vm733_vm13 = vcmask 3072  }
 0x2b0   :  { %v365_v25 = vsel %vm361_vm4, %v752_v23, 0.0 }
 0x2b4   :  { %755 = vmatmul.msk.f32.gmra.mxu0 %vm372_vm12, %v364_v24 }
 0x2bc   :  { %756 = vmatmul.msk.f32.gmra.mxu0 %vm372_vm12, %v365_v25  ;;  %v667_v25 = vadd.f32 %v801_v5, %v666_v17 }
 0x320   :  { %v402_v27 = vpop.f32.mrf.mxu0 }
 0x321   :  { %v403_v28 = vadd.f32 %v779_v26, %v402_v27 }
 0x323   :  { %432 = vmatpush.msrb.mxu1 %v403_v28 }
 0x324   :  { %757 = vmatmul.msk.f32.vlgmr.msrb.gmra.mxu1 %vm372_vm12, %v366_v29 }
 0x329   :  { %v405_v30 = vpop.f32.mrf.mxu0 }
 0x32a   :  { %v406_v31 = vadd.f32 %v779_v26, %v405_v30 }
 0x32c   :  { %452 = vmatpush.msrb.mxu2 %v406_v31 }
 0x32d   :  { %758 = vmatmul.msk.f32.vlgmr.msrb.gmra.mxu2 %vm372_vm12, %v366_v29 }
 0x32e   :  { %534 = vmatpush.msra.mxu2 %v504_v32  ;;  %v669_v32 = vsel %vm668_vm6, %v801_v5, %v667_v25 }
 0x330   :  { %535 = vmatpush.msra.mxu2 %v503_v33 }
 0x331   :  { %v408_v34 = vpop.f32.mrf.mxu0 }
 0x332   :  { %v409_v35 = vadd.f32 %v779_v26, %v408_v34  ;;  %536 = vmatpush.msra.mxu2 %v502_v38 }
 0x334   :  { %472 = vmatpush.msrb.mxu3 %v409_v35  ;;  %537 = vmatpush.msra.mxu2 %v501_v39 }
 0x335   :  { %759 = vmatmul.msk.f32.vlgmr.msrb.gmra.mxu3 %vm372_vm12, %v366_v29 }
 0x339   :  { %v411_v36 = vpop.f32.mrf.mxu0 }
 0x33a   :  { %v412_v37 = vadd.f32 %v779_v26, %v411_v36 }
 0x33c   :  { %492 = vmatpush.msra.mxu1 %v412_v37 }
 0x33d   :  { %760 = vmatmul.msk.f32.vlgmr.msra.gmra.mxu1 %vm372_vm12, %v366_v29 }
 0x3a1   :  { %v434_v40 = vpop.f32.mrf.mxu1 }
 0x3a2   :  { %v497_v41 = vmax.f32 %v434_v40, 0.0 }
 0x3a4   :  { %761 = vmatmul.msk.f32.vlgmr.msra.gmra.mxu2 %vm509_vm5, %v497_v41 }
 0x3b0   :  { %v454_v42 = vpop.f32.mrf.mxu2 }
 0x3b1   :  { %v498_v43 = vmax.f32 %v454_v42, 0.0 }
 0x3b3   :  { %762 = vmatmul.msk.f32.gmra.mxu2 %vm509_vm5, %v498_v43 }
 0x3b8   :  { %v474_v44 = vpop.f32.mrf.mxu3 }
 0x3b9   :  { %v499_v15 = vmax.f32 %v474_v44, 0.0 }
 0x3ba   :  { %v494_v45 = vpop.f32.mrf.mxu1 }
 0x3bb   :  { %763 = vmatmul.msk.f32.gmra.mxu2 %vm509_vm5, %v499_v15  ;;  %v500_v46 = vmax.f32 %v494_v45, 0.0 }
 0x3c3   :  { %764 = vmatmul.msk.f32.gmra.mxu2 %vm509_vm5, %v500_v46  ;;  %v781_v46 = vld [vmem:[#allocation2] ss:$0 sm:$0xff] }
 0x427   :  { %v539_v48 = vpop.f32.mrf.mxu2 }
 0x428   :  { %v540_v49 = vadd.f32 %v780_v47, %v539_v48 }
 0x42a   :  { %566 = vmatpush.msra.mxu3 %v540_v49 }
 0x42b   :  { %765 = vmatmul.msk.f32.vlgmr.msra.gmra.mxu3 %vm372_vm12, %v366_v29 }
 0x436   :  { %v542_v50 = vpop.f32.mrf.mxu2 }
 0x437   :  { %v543_v51 = vadd.f32 %v780_v47, %v542_v50 }
 0x439   :  { %586 = vmatpush.msrb.mxu1 %v543_v51 }
 0x43a   :  { %766 = vmatmul.msk.f32.vlgmr.msrb.gmra.mxu1 %vm372_vm12, %v366_v29 }
 0x43e   :  { %v545_v52 = vpop.f32.mrf.mxu2 }
 0x43f   :  { %v546_v53 = vadd.f32 %v780_v47, %v545_v52 }
 0x441   :  { %606 = vmatpush.msrb.mxu3 %v546_v53 }
 0x442   :  { %767 = vmatmul.msk.f32.vlgmr.msrb.gmra.mxu3 %vm372_vm12, %v366_v29 }
 0x443   :  { %706 = vmatpush.msra.mxu3 %v677_v57 }
 0x445   :  { %707 = vmatpush.msra.mxu3 %v676_v59 }
 0x446   :  { %v548_v54 = vpop.f32.mrf.mxu2 }
 0x447   :  { %v549_v55 = vadd.f32 %v780_v47, %v548_v54  ;;  %708 = vmatpush.msra.mxu3 %v675_v61 }
 0x449   :  { %626 = vmatpush.msra.mxu1 %v549_v55  ;;  %709 = vmatpush.msra.mxu3 %v674_v0 }
 0x44a   :  { %768 = vmatmul.msk.f32.vlgmr.msra.gmra.mxu1 %vm372_vm12, %v366_v29 }
 0x4ae   :  { %v568_v56 = vpop.f32.mrf.mxu3 }
 0x4af   :  { %v631_v58 = vmax.f32 %v568_v56, 0.0 }
 0x4b1   :  { %v635_v62 = vsel %vm509_vm5, %v631_v58, 0.0 }
 0x4b2   :  { %v636_v2 = vrot.slane %v635_v62, 4 }
 0x4b4   :  { %v637_v6 = vadd.f32 %v636_v2, %v635_v62 }
 0x4b6   :  { %v638_v9 = vrot.slane %v637_v6, 2 }
 0x4b7   :  { %v588_v63 = vpop.f32.mrf.mxu1 }
 0x4b8   :  { %v632_v1 = vmax.f32 %v588_v63, 0.0  ;;  %v639_v13 = vadd.f32 %v638_v9, %v637_v6 }
 0x4ba   :  { %v642_v3 = vsel %vm509_vm5, %v632_v1, 0.0  ;;  %v640_v22 = vrot.slane %v639_v13, 1 }
 0x4bb   :  { %v643_v4 = vrot.slane %v642_v3, 4 }
 0x4bc   :  { %v641_v30 = vadd.f32 %v640_v22, %v639_v13 }
 0x4bd   :  { %v644_v7 = vadd.f32 %v643_v4, %v642_v3 }
 0x4be   :  { %v670_v37 = vmul.f32 %v669_v32, %v641_v30 }
 0x4bf   :  { %v645_v10 = vrot.slane %v644_v7, 2 }
 0x4c1   :  { %v646_v14 = vadd.f32 %v645_v10, %v644_v7 }
 0x4c3   :  { %v647_v23 = vrot.slane %v646_v14, 1 }
 0x4c5   :  { %v608_v12 = vpop.f32.mrf.mxu3  ;;  %v648_v31 = vadd.f32 %v647_v23, %v646_v14 }
 0x4c6   :  { %v633_v16 = vmax.f32 %v608_v12, 0.0 }
 0x4c7   :  { %v628_v18 = vpop.f32.mrf.mxu1  ;;  %v671_v38 = vmul.f32 %v669_v32, %v648_v31 }
 0x4c8   :  { %v649_v19 = vsel %vm509_vm5, %v633_v16, 0.0  ;;  %v634_v20 = vmax.f32 %v628_v18, 0.0 }
 0x4c9   :  { %v650_v21 = vrot.slane %v649_v19, 4  ;;  %v687_v43 = vsel %vm686_vm7, %v671_v38, %v670_v37 }
 0x4ca   :  { %v656_v24 = vsel %vm509_vm5, %v634_v20, 0.0 }
 0x4cb   :  { %v651_v26 = vadd.f32 %v650_v21, %v649_v19  ;;  %v657_v27 = vrot.slane %v656_v24, 4 }
 0x4cd   :  { %v652_v28 = vrot.slane %v651_v26, 2  ;;  %v658_v29 = vadd.f32 %v657_v27, %v656_v24 }
 0x4cf   :  { %v653_v33 = vadd.f32 %v652_v28, %v651_v26  ;;  %v659_v34 = vrot.slane %v658_v29, 2 }
 0x4d1   :  { %v654_v35 = vrot.slane %v653_v33, 1  ;;  %v660_v36 = vadd.f32 %v659_v34, %v658_v29 }
 0x4d3   :  { %v655_v39 = vadd.f32 %v654_v35, %v653_v33  ;;  %v661_v40 = vrot.slane %v660_v36, 1 }
 0x4d5   :  { %v672_v41 = vmul.f32 %v669_v32, %v655_v39  ;;  %v662_v42 = vadd.f32 %v661_v40, %v660_v36 }
 0x4d7   :  { %v673_v44 = vmul.f32 %v669_v32, %v662_v42  ;;  %v689_v15 = vsel %vm688_vm8, %v672_v41, %v687_v43 }
 0x4d9   :  { %v691_v45 = vsel %vm690_vm9, %v673_v44, %v689_v15 }
 0x4da   :  { %769 = vmatmul.msk.f32.vlgmr.msra.gmra.mxu3 %vm509_vm5, %v691_v45 }
 0x55d   :  { %v711_v47 = vpop.f32.mrf.mxu3 }
 0x55e   :  { %v712_v48 = vadd.f32 %v781_v46, %v711_v47 }
 0x560   :  { %v770_v49 = vmul.f32 -1.442695, %v712_v48 }
 0x562   :  { %802 = vpow2.f32 %v770_v49 }
 0x568   :  { %v803_v50 = vpop.eup %802 }
 0x569   :  { %v717_v51 = vadd.f32 1.0, %v803_v50 }
 0x56b   :  { %804 = vrcp.f32 %v717_v51  ;;  %v729_v55 = vand.u32 2147483648, %v717_v51  ;;  %v727_v57 = vand.u32 2147483647, %v717_v51  ;;  %vm723_vm11 = vweird.f32 %v717_v51 }
 0x56d   :  { %v730_v59 = vor.u32 1.1754944e-38, %v729_v55  ;;  %vm728_vm14 = vcmp.eq.f32.partialorder %v727_v57, 8.507059e+37 }
 0x571   :  { %v805_v52 = vpop.eup %804 }
 0x572   :  { %v719_v53 = vmul.f32 %v805_v52, %v717_v51  ;;  %vm724_vm10 = vweird.f32 %v805_v52 }
 0x573   :  { %vm725_vm12 = vmor %vm723_vm11, %vm724_vm10 }
 0x574   :  { %v720_v54 = vsub.f32 1.0, %v719_v53 }
 0x576   :  { %v721_v56 = vmul.f32 %v805_v52, %v720_v54 }
 0x578   :  { %v722_v58 = vadd.f32 %v805_v52, %v721_v56 }
 0x57a   :  { %v726_v60 = vsel %vm725_vm12, %v805_v52, %v722_v58 }
 0x57b   :  { %v731_v61 = vsel %vm728_vm14, %v730_v59, %v726_v60 }
 0x57c   :  { %734 = vst.msk [vmem:[%s1071_s8] sm:$0xf] %vm733_vm13, %v731_v61 }
 0x57d   :  { %739 = vsyncpa [#allocation4], 1 }
 0x57e   :  { %740 = vsyncpa [#allocation6], 1 }

</bundles_post_ra>
